<compile_context>
chip_gen: v7x
topology: tpu7x:2x2x1
jax: 0.10.0
libtpu: 0.0.40
codegen_flags: <defaults>
</compile_context>

<pallas_src>
import functools

import jax
import jax.numpy as jnp
import numpy as np
from jax.experimental import pallas as pl
from jax.experimental.pallas import tpu as pltpu


_VMEM_BLOCK_BUDGET = 24 * 1024 * 1024  # double-buffered blocks + f32 acc per step


def _round_up(x, m):
    return ((x + m - 1) // m) * m


def _block_bytes(tm, te, k, itemsize):
    """VMEM for one grid step: double-buffered in/out blocks + f32 matmul acc."""
    io = 2 * (tm * k + k * te + te + tm * te) * itemsize
    acc = tm * te * 4
    return io + acc


def _pick_tm(m_eff, te, k, itemsize):
    # Whole-M tile for small problems: no M tiling, no padding, one grid step.
    if m_eff <= 1024 and _block_bytes(m_eff, te, k, itemsize) <= _VMEM_BLOCK_BUDGET:
        return m_eff
    cands = [1024, 512, 256, 128, 64, 32, 16, 8]
    fitting = [t for t in cands
               if t <= m_eff and _block_bytes(t, te, k, itemsize) <= _VMEM_BLOCK_BUDGET]
    if not fitting:
        return 8
    for t in fitting:          # prefer a tile that divides M -> no pad / slice pass
        if m_eff % t == 0:
            return t
    return fitting[0]          # largest fitting tile; last-resort padding of M


def _pick_tiles(m_eff, e_pad, k, itemsize):
    # Prefer keeping the whole (padded) E resident so the weight is read once.
    te_cands = [e_pad] + [t for t in (1024, 512, 256, 128)
                          if t < e_pad and e_pad % t == 0]
    for te in te_cands:
        tm = _pick_tm(m_eff, te, k, itemsize)
        if tm >= min(256, m_eff):
            return tm, te
    te = te_cands[-1]
    return _pick_tm(m_eff, te, k, itemsize), te


def _patch_embed_kernel(p_ref, w_ref, b_ref, o_ref):
    # p_ref: (TM, K)  patches tile
    # w_ref: (K, TE)  flattened conv weight tile (invariant over inner M sweep)
    # b_ref: (1, TE)  bias tile
    # o_ref: (TM, TE)
    acc = jnp.dot(p_ref[...], w_ref[...], preferred_element_type=jnp.float32)
    o_ref[...] = (acc + b_ref[...].astype(jnp.float32)).astype(o_ref.dtype)


@functools.partial(jax.jit, static_argnames=("kernel_size", "stride", "padding"))
def patch_embed(x, weight, bias, kernel_size=(8, 8), stride=(8, 8), padding=(0, 0)):
    """
    x:      [N, C, H, W]   (NCHW, like PyTorch)
    weight: [E, C, kH, kW] (PyTorch Conv2d weight layout)
    bias:   [E]
    returns [N, H', W', E] (== proj(x).permute(0, 2, 3, 1))
    """
    assert kernel_size == stride, "PatchEmbed uses kernel_size == stride"
    if padding != (0, 0):
        x = jnp.pad(x, ((0, 0), (0, 0),
                        (padding[0], padding[0]), (padding[1], padding[1])))
    N, C, H, W = x.shape
    E = weight.shape[0]
    kH, kW = kernel_size
    Hp, Wp = H // kH, W // kW
    M = N * Hp * Wp
    K = C * kH * kW
    dtype = x.dtype
    itemsize = jnp.dtype(dtype).itemsize

    # --- glue: extract non-overlapping patches in (C, kH, kW) order -> [M, K] ---
    patches = x.reshape(N, C, Hp, kH, Wp, kW)
    patches = jnp.transpose(patches, (0, 2, 4, 1, 3, 5)).reshape(M, K)

    # Flatten conv weight: [E, C, kH, kW] -> [K, E] (same (C,kH,kW) order).
    w_flat = jnp.transpose(weight.reshape(E, K))

    # E: pad only if embed_dim is not already lane-aligned (weight/bias only).
    E_pad = E if E % 128 == 0 else _round_up(E, 128)
    if E_pad != E:
        w_flat = jnp.pad(w_flat, ((0, 0), (0, E_pad - E)))
        bias = jnp.pad(bias, (0, E_pad - E))
    b_row = bias.reshape(1, E_pad)

    # Tile selection under a VMEM byte budget (safe on v7x's 64 MiB VMEM too).
    min_sub = {4: 8, 2: 16, 1: 32}.get(itemsize, 8)
    M_eff = _round_up(M, min_sub)
    TM, TE = _pick_tiles(M_eff, E_pad, K, itemsize)
    M_pad = _round_up(M_eff, TM)
    if M_pad != M:
        patches = jnp.pad(patches, ((0, M_pad - M), (0, 0)))

    # E outer (slow) axis, M inner (fast) axis: weight block index is constant
    # across the inner sweep, so its HBM fetch is elided by the pipeliner.
    grid = (E_pad // TE, M_pad // TM)

    block_bytes = _block_bytes(TM, TE, K, itemsize)
    vmem_limit = int(min(max(block_bytes + (4 << 20), 16 << 20), 48 << 20))

    cost = pl.CostEstimate(
        flops=2 * M * K * E,
        transcendentals=0,
        bytes_accessed=itemsize * (M * K + K * E + M * E),
    )

    out = pl.pallas_call(
        _patch_embed_kernel,
        out_shape=jax.ShapeDtypeStruct((M_pad, E_pad), dtype),
        grid_spec=pltpu.PrefetchScalarGridSpec(
            num_scalar_prefetch=0,
            grid=grid,
            in_specs=[
                pl.BlockSpec((TM, K), lambda j, i: (i, 0)),   # patches
                pl.BlockSpec((K, TE), lambda j, i: (0, j)),   # weight (invariant over i)
                pl.BlockSpec((1, TE), lambda j, i: (0, j)),   # bias   (invariant over i)
            ],
            out_specs=pl.BlockSpec((TM, TE), lambda j, i: (i, j)),
        ),
        compiler_params=pltpu.CompilerParams(
            dimension_semantics=("parallel", "parallel"),
            vmem_limit_bytes=vmem_limit,
        ),
        cost_estimate=cost,
    )(patches, w_flat, b_row)

    if M_pad != M or E_pad != E:
        out = out[:M, :E]
    return out.reshape(N, Hp, Wp, E)


def _reference(x, weight, bias, kernel_size, stride):
    # PyTorch-equivalent conv (NCHW, OIHW) then permute(0, 2, 3, 1)
    y = jax.lax.conv_general_dilated(
        x, weight,
        window_strides=stride,
        padding="VALID",
        dimension_numbers=("NCHW", "OIHW", "NCHW"),
    )
    y = y + bias.reshape(1, -1, 1, 1)
    return jnp.transpose(y, (0, 2, 3, 1))


if __name__ == "__main__":
    key = jax.random.PRNGKey(0)
    k1, k2, k3 = jax.random.split(key, 3)

    # Small shapes: batch=2, in_chans=3, 16x16 image, 8x8 patches, embed_dim=128
    N, C, H, W = 2, 3, 16, 16
    kernel_size = (8, 8)
    stride = (8, 8)
    E = 128

    x = jax.random.normal(k1, (N, C, H, W), dtype=jnp.float32)
    weight = jax.random.normal(
        k2, (E, C, kernel_size[0], kernel_size[1]), dtype=jnp.float32) * 0.02
    bias = jax.random.normal(k3, (E,), dtype=jnp.float32) * 0.02

    out = patch_embed(x, weight, bias, kernel_size=kernel_size, stride=stride)
    out = jax.block_until_ready(out)

    ref = jax.block_until_ready(_reference(x, weight, bias, kernel_size, stride))
    assert out.shape == (N, H // kernel_size[0], W // kernel_size[1], E)
    np.testing.assert_allclose(np.asarray(out), np.asarray(ref),
                               rtol=1e-4, atol=1e-4)
    print("KERNEL_OK")
</pallas_src>

<mosaic_0001>
module attributes {stable_mosaic.version = 11 : i64} {
  func.func @_patch_embed_kernel(%arg0: i32, %arg1: i32, %arg2: memref<8x192xf32, #tpu.memory_space<vmem>>, %arg3: memref<192x128xf32, #tpu.memory_space<vmem>>, %arg4: memref<1x128xf32, #tpu.memory_space<vmem>>, %arg5: memref<8x128xf32, #tpu.memory_space<vmem>>) attributes {dimension_semantics = [#tpu.dimension_semantics<parallel>, #tpu.dimension_semantics<parallel>], iteration_bounds = array<i64: 1, 1>, scalar_prefetch = 0 : i64, scratch_operands = 0 : i64, tpu.core_type = #tpu.core_type<tc>, window_params = [{transform_indices = @transform_0, window_bounds = array<i64: 8, 192>}, {transform_indices = @transform_1, window_bounds = array<i64: 192, 128>}, {transform_indices = @transform_2, window_bounds = array<i64: 1, 128>}, {transform_indices = @transform_3, window_bounds = array<i64: 8, 128>}]} {
    %c0 = arith.constant 0 : index
    %c0_0 = arith.constant 0 : index
    %0 = vector.load %arg2[%c0, %c0_0] : memref<8x192xf32, #tpu.memory_space<vmem>>, vector<8x192xf32>
    %c0_1 = arith.constant 0 : index
    %c0_2 = arith.constant 0 : index
    %1 = vector.load %arg3[%c0_1, %c0_2] : memref<192x128xf32, #tpu.memory_space<vmem>>, vector<192x128xf32>
    %cst = arith.constant dense<0.000000e+00> : vector<8x128xf32>
    %2 = tpu.matmul %0, %1, %cst {dimension_numbers = #tpu.dot_dimension_numbers<[1], [0], [0], [1], [0, 0, 1, 1], [], []>} : vector<8x192xf32>, vector<192x128xf32>, vector<8x128xf32> -> vector<8x128xf32>
    %c0_3 = arith.constant 0 : index
    %c0_4 = arith.constant 0 : index
    %3 = vector.load %arg4[%c0_3, %c0_4] : memref<1x128xf32, #tpu.memory_space<vmem>>, vector<1x128xf32>
    %4 = vector.broadcast %3 : vector<1x128xf32> to vector<8x128xf32>
    %5 = arith.addf %2, %4 : vector<8x128xf32>
    %c0_5 = arith.constant 0 : index
    %c0_6 = arith.constant 0 : index
    %6 = vector.load %arg5[%c0_5, %c0_6] : memref<8x128xf32, #tpu.memory_space<vmem>>, vector<8x128xf32>
    tpu.vector_store %arg5[%c0_5, %c0_6], %5 {strides = array<i32>} : memref<8x128xf32, #tpu.memory_space<vmem>>, vector<8x128xf32>,
    return
  }
  func.func @transform_0(%arg0: i32, %arg1: i32) -> (i32, i32) {
    %c0_i32 = arith.constant 0 : i32
    %c0_i32_0 = arith.constant 0 : i32
    return %arg1, %c0_i32 : i32, i32
  }
  func.func @transform_1(%arg0: i32, %arg1: i32) -> (i32, i32) {
    %c0_i32 = arith.constant 0 : i32
    %c0_i32_0 = arith.constant 0 : i32
    return %c0_i32, %arg0 : i32, i32
  }
  func.func @transform_2(%arg0: i32, %arg1: i32) -> (i32, i32) {
    %c0_i32 = arith.constant 0 : i32
    %c0_i32_0 = arith.constant 0 : i32
    return %c0_i32, %arg0 : i32, i32
  }
  func.func @transform_3(%arg0: i32, %arg1: i32) -> (i32, i32) {
    %c0_i32 = arith.constant 0 : i32
    return %arg1, %arg0 : i32, i32
  }
}

</mosaic_0001>

<bundles_post_ra>
// kernel: patch_embed.1
= control target key start
LH: loop header
LB: loop body
LE: loop exit
PB: predicated region body
PF: predicated region fallthrough
CT: control target
= control target key end

     0   :  { %v201_v3 = vmov 0.0|0.0   ;;  %vm48_vm0 = vcmask 523264   ;;  %s316_s0 = inlined_call_operand.vmem [shape: f32[8,192], index: 0, kind: input, shape index: {}]   ;;  %s317_s1 = inlined_call_operand.vmem [shape: f32[192,128], index: 1, kind: input, shape index: {}]   ;;  %s318_s2 = inlined_call_operand.vmem [shape: f32[1,128], index: 2, kind: input, shape index: {}]   ;;  %s319_s3 = inlined_call_operand.hbm [shape: f32[8,128], index: 3, kind: output, shape index: {}]  }
   0x1   :  { %v17_v0 = vld [vmem:[%s317_s1] sm:$0xff]  ;;  %v18_v1 = vld [vmem:[%s317_s1 + $0x8] sm:$0xff]  ;;  %v19_v2 = vld [vmem:[%s317_s1 + $0x10] sm:$0xff]  ;;  %139 = vmatprep.subr.bf16.mxu0 %v201_v3 }
   0x2   :  { %v140_v4 = vpack.c.bf16 %v18_v1, %v17_v0  ;;  %v20_v5 = vld [vmem:[%s317_s1 + $0x18] sm:$0xff]  ;;  %v21_v7 = vld [vmem:[%s317_s1 + $0x20] sm:$0xff]  ;;  %v22_v8 = vld [vmem:[%s317_s1 + $0x28] sm:$0xff] }
   0x3   :  { %v143_v6 = vpack.c.bf16 %v20_v5, %v19_v2  ;;  %v146_v9 = vpack.c.bf16 %v22_v8, %v21_v7  ;;  %v23_v10 = vld [vmem:[%s317_s1 + $0x30] sm:$0xff]  ;;  %v24_v11 = vld [vmem:[%s317_s1 + $0x38] sm:$0xff]  ;;  %v16_v12 = vld [vmem:[%s316_s0 + $0x8] sm:$0xff] }
   0x4   :  { %141 = vmatpush1.bf16.msra.mxu0 %v140_v4  ;;  %138 = vmatprep.mubr.msk.f32.mxu0 %vm48_vm0, %v16_v12 }
   0x5   :  { %142 = vmatprep.subr.bf16.mxu0 %v201_v3 }
   0x8   :  { %144 = vmatpush1.bf16.msra.mxu0 %v143_v6 }
   0x9   :  { %145 = vmatprep.subr.bf16.mxu0 %v201_v3 }
   0xa   :  { %8 = vsyncpa [#allocation3], 0  ;;  %v149_v13 = vpack.c.bf16 %v24_v11, %v23_v10  ;;  %v25_v14 = vld [vmem:[%s317_s1 + $0x40] sm:$0xff]  ;;  %v26_v15 = vld [vmem:[%s317_s1 + $0x48] sm:$0xff]  ;;  %s202_s12 = smov [#allocation2]  }
   0xb   :  { %v152_v16 = vpack.c.bf16 %v26_v15, %v25_v14  ;;  %v27_v17 = vld [vmem:[%s317_s1 + $0x50] sm:$0xff]  ;;  %v28_v18 = vld [vmem:[%s317_s1 + $0x58] sm:$0xff]  ;;  %v29_v20 = vld [vmem:[%s317_s1 + $0x60] sm:$0xff]  ;;  %s129_s13 = sshll.u32 %s202_s12, 4  ;;  %s130_s13 = int_to_ptr.vmem [resolvable:$true] %s129_s13 }
   0xc   :  { %147 = vmatpush1.bf16.msra.mxu0 %v146_v9  ;;  %v155_v19 = vpack.c.bf16 %v28_v18, %v27_v17  ;;  %v30_v21 = vld [vmem:[%s317_s1 + $0x68] sm:$0xff]  ;;  %v31_v23 = vld [vmem:[%s317_s1 + $0x70] sm:$0xff]  ;;  %v32_v24 = vld [vmem:[%s317_s1 + $0x78] sm:$0xff]  ;;  %p182_p1 = scmp.lt.s32.totalorder %s130_s13, %s130_s13 }
   0xd   :  { %148 = vmatprep.subr.bf16.mxu0 %v201_v3  ;;  %v158_v22 = vpack.c.bf16 %v30_v21, %v29_v20  ;;  %v161_v25 = vpack.c.bf16 %v32_v24, %v31_v23  ;;  %v33_v26 = vld [vmem:[%s317_s1 + $0x80] sm:$0xff]  ;;  %v34_v27 = vld [vmem:[%s317_s1 + $0x88] sm:$0xff]  ;;  %v35_v29 = vld [vmem:[%s317_s1 + $0x90] sm:$0xff] }
   0xe   :  { %v164_v28 = vpack.c.bf16 %v34_v27, %v33_v26  ;;  %v36_v30 = vld [vmem:[%s317_s1 + $0x98] sm:$0xff]  ;;  %v37_v32 = vld [vmem:[%s317_s1 + $0xa0] sm:$0xff]  ;;  %v38_v33 = vld [vmem:[%s317_s1 + $0xa8] sm:$0xff] }
   0xf   :  { %v167_v31 = vpack.c.bf16 %v36_v30, %v35_v29  ;;  %v170_v34 = vpack.c.bf16 %v38_v33, %v37_v32  ;;  %v39_v35 = vld [vmem:[%s317_s1 + $0xb0] sm:$0xff]  ;;  %v40_v36 = vld [vmem:[%s317_s1 + $0xb8] sm:$0xff]  ;;  %v15_v38 = vld [vmem:[%s316_s0] sm:$0xff]  ;;  %s177_s1 = scalar_lea.vmem %s130_s13, 128 }
  0x10   :  { %150 = vmatpush1.bf16.msra.mxu0 %v149_v13  ;;  %v173_v37 = vpack.c.bf16 %v40_v36, %v39_v35  ;;  %v137_v39 = vld [vmem:[%s318_s2] ss:$0 sm:$0xff]  ;;  %p178_p0 = scmp.ne.s32.totalorder %s130_s13, %s177_s1  ;;  %p183_p2 = scmp.lt.s32.totalorder %s177_s1, %s177_s1 }
  0x11   :  { %151 = vmatprep.subr.bf16.mxu0 %v201_v3 }
  0x12   :  { %p184_p3 = por %p183_p2, %p182_p1 }
  0x14   :  { %153 = vmatpush1.bf16.msra.mxu0 %v152_v16  ;;  %p185_p4 = pnand %p184_p3, %p178_p0 }
  0x15   :  { %154 = vmatprep.subr.bf16.mxu0 %v201_v3 }
  0x18   :  { %156 = vmatpush1.bf16.msra.mxu0 %v155_v19 }
  0x19   :  { %157 = vmatprep.subr.bf16.mxu0 %v201_v3 }
  0x1c   :  { %159 = vmatpush1.bf16.msra.mxu0 %v158_v22 }
  0x1d   :  { %160 = vmatprep.subr.bf16.mxu0 %v201_v3 }
  0x20   :  { %162 = vmatpush1.bf16.msra.mxu0 %v161_v25 }
  0x21   :  { %163 = vmatprep.subr.bf16.mxu0 %v201_v3 }
  0x24   :  { %165 = vmatpush1.bf16.msra.mxu0 %v164_v28 }
  0x25   :  { %166 = vmatprep.subr.bf16.mxu0 %v201_v3 }
  0x28   :  { %168 = vmatpush1.bf16.msra.mxu0 %v167_v31 }
  0x29   :  { %169 = vmatprep.subr.bf16.mxu0 %v201_v3 }
  0x2c   :  { %171 = vmatpush1.bf16.msra.mxu0 %v170_v34 }
  0x2d   :  { %172 = vmatprep.subr.bf16.mxu0 %v201_v3 }
  0x30   :  { %174 = vmatpush1.bf16.msra.mxu0 %v173_v37 }
  0x33   :  { %117 = vmatmul.mubr.f32.vlgmr.msra.gmra.mrb[0].mxu0 %v15_v38 }
 0x106   :  { %v118_v40 = vpop.f32.mrb[0].mxu0 }
 0x107   :  { %v119_v41 = vadd.f32 %v137_v39, %v118_v40  ;;  %v120_v42 = vpop.f32.mrb[1].mxu0 }
 0x109   :  { %122 = vst [vmem:[#allocation2] sm:$0xff] %v119_v41 }
 0x10a   :  { %188 = shalt.err (!%p185_p4)
}
 0x10b   :  { %s189_s15 = scalar_lea.hbm %s319_s3, 128 }
 0x10c   :  { %p190_p5 = scmp.ne.s32.totalorder %s319_s3, %s189_s15  ;;  %p193_p6 = scmp.lt.u32.totalorder %s189_s15, %s319_s3 }
 0x10e   :  { %p195_p7 = pnand %p193_p6, %p190_p5 }
 0x110   :  { %198 = shalt.err (!%p195_p7)
}
 0x111   :  { %132 = dma.vmem_to_hbm [thread:$0]  %s130_s13, 128, %s319_s3, [#allocation3]  }
 0x112   :  { %199 = dma.done.wait [#allocation3], 128  }
 0x113   :  { %200 = vsyncadd [#allocation3], 4294967168 }
 0x114   :  { %136 = vsyncpa [#allocation3], 1 }

</bundles_post_ra>
